<compile_context>
chip_gen: v7x
topology: tpu7x:2x2x1
jax: 0.10.0
libtpu: 0.0.40
codegen_flags: <defaults>
</compile_context>

<pallas_src>
import jax
import jax.numpy as jnp
from jax.experimental import pallas as pl
from jax.experimental.pallas import tpu as pltpu


def _rope_kernel_full(pos_ref, inv_ref, cos_ref, sin_ref):
    """Full-width path (dim < 256): one unmasked, lane-dense store per output.

    pos_ref: [1, TS, 1] int32      inv_ref: [1, dim] f32 (inv_freq duplicated)
    cos_ref/sin_ref: [1, TS, dim] out dtype
    """
    pos = pos_ref[0].astype(jnp.float32)              # [TS, 1]  (VPU cast)
    emb = pos * inv_ref[...]                          # [TS, dim] broadcast outer product
    cos_ref[0] = jnp.cos(emb).astype(cos_ref.dtype)   # single full-width store
    sin_ref[0] = jnp.sin(emb).astype(sin_ref.dtype)


def _rope_kernel_half(pos_ref, inv_ref, cos_ref, sin_ref):
    """Half-width path (dim >= 256): half the EUP work; half-slice stores are
    whole 128-lane groups here, so they remain unmasked.

    pos_ref: [1, TS, 1] int32      inv_ref: [1, dim/2] f32
    cos_ref/sin_ref: [1, TS, dim] out dtype
    """
    half = inv_ref.shape[1]
    pos = pos_ref[0].astype(jnp.float32)              # [TS, 1]
    freqs = pos * inv_ref[...]                        # [TS, half]
    cos_h = jnp.cos(freqs).astype(cos_ref.dtype)
    sin_h = jnp.sin(freqs).astype(sin_ref.dtype)
    # emb = concat(freqs, freqs): two static half-slice stores (lane-aligned).
    cos_ref[0, :, :half] = cos_h
    cos_ref[0, :, half:] = cos_h
    sin_ref[0, :, :half] = sin_h
    sin_ref[0, :, half:] = sin_h


def _pick_seq_tile(S, B, dim, itemsize, target_block_bytes):
    """Sequence tile sized so each output block is ~target_block_bytes.

    Multiple of 8 (sublane) unless it equals the full S extent.  When S is not a
    multiple of the tile, the padded tail rows hold unspecified positions, but
    cos/sin of them stay finite and the OOB rows are masked on writeback.
    """
    ts = (target_block_bytes // max(1, dim * itemsize)) // 8 * 8
    ts = max(8, ts)
    ts = min(ts, S)
    # v7x has 2 TensorCores; with B == 1 make sure the "parallel" sequence axis
    # still yields >= 2 grid programs so neither core sits idle.
    if B == 1 and S >= 16:
        ts = min(ts, max(8, ((S // 2 + 7) // 8) * 8))
    return ts


def gemma_rotary_embedding(x, position_ids, dim, base=10000.0,
                           target_block_bytes=2 * 1024 * 1024):
    """Returns (cos, sin), each [B, S, dim] with dtype x.dtype.

    x: [B, Num_Heads_KV, S, Head_Dim] -- consulted only for its dtype (as in torch).
    position_ids: [B, S] integer positions.
    """
    B, S = position_ids.shape
    half = dim // 2
    out_dtype = x.dtype
    itemsize = jnp.dtype(out_dtype).itemsize

    # Buffer construction (trace-time constant, matches torch __init__).
    inv_freq = 1.0 / (base ** (jnp.arange(0, dim, 2, dtype=jnp.float32) / dim))

    if half % 128 == 0:
        # half is a whole 128-lane group: half-slice stores are already unmasked.
        kernel = _rope_kernel_half
        inv_arg = inv_freq.reshape(1, half)
    else:
        # Duplicate inv_freq so the kernel emits one lane-dense full-width store.
        kernel = _rope_kernel_full
        inv_arg = jnp.concatenate([inv_freq, inv_freq]).reshape(1, dim)
    inv_width = inv_arg.shape[1]

    # Sublane-oriented int32 positions; the f32 cast happens on the VPU in-kernel.
    # (int32 -> f32 loses exactness above 2^24, same as the PyTorch float path.)
    pos3 = position_ids.astype(jnp.int32).reshape(B, S, 1)

    ts = _pick_seq_tile(S, B, dim, itemsize, target_block_bytes)
    grid = (B, pl.cdiv(S, ts))

    cos, sin = pl.pallas_call(
        kernel,
        out_shape=(
            jax.ShapeDtypeStruct((B, S, dim), out_dtype),
            jax.ShapeDtypeStruct((B, S, dim), out_dtype),
        ),
        grid_spec=pltpu.PrefetchScalarGridSpec(
            num_scalar_prefetch=0,
            grid=grid,
            in_specs=[
                pl.BlockSpec((1, ts, 1), lambda b, s: (b, s, 0)),     # positions tile
                pl.BlockSpec((1, inv_width), lambda b, s: (0, 0)),    # inv_freq (DMA once)
            ],
            out_specs=[
                pl.BlockSpec((1, ts, dim), lambda b, s: (b, s, 0)),
                pl.BlockSpec((1, ts, dim), lambda b, s: (b, s, 0)),
            ],
        ),
        compiler_params=pltpu.CompilerParams(
            # Both axes independent; on v7x the 2 TensorCores split the grid.
            dimension_semantics=("parallel", "parallel")),
    )(pos3, inv_arg)
    return cos, sin


if __name__ == "__main__":
    key = jax.random.PRNGKey(0)
    B, KV_HEADS, S, HEAD_DIM = 2, 4, 8, 32

    kx, _ = jax.random.split(key)
    # x: [Batch, Num_Heads_KV, Seq_Len, Head_Dim] -- only dtype matters here.
    x = jax.random.normal(kx, (B, KV_HEADS, S, HEAD_DIM), dtype=jnp.float32)
    position_ids = jnp.broadcast_to(jnp.arange(S, dtype=jnp.int32), (B, S))

    cos, sin = gemma_rotary_embedding(x, position_ids, dim=HEAD_DIM)
    cos = jax.block_until_ready(cos)
    sin = jax.block_until_ready(sin)

    # Reference check in plain JAX.
    inv_freq = 1.0 / (10000.0 ** (jnp.arange(0, HEAD_DIM, 2, dtype=jnp.float32)
                                  / HEAD_DIM))
    freqs_ref = position_ids.astype(jnp.float32)[:, :, None] * inv_freq[None, None, :]
    emb_ref = jnp.concatenate([freqs_ref, freqs_ref], axis=-1)
    assert cos.shape == (B, S, HEAD_DIM) and sin.shape == (B, S, HEAD_DIM)
    assert cos.dtype == x.dtype and sin.dtype == x.dtype
    assert jnp.allclose(cos, jnp.cos(emb_ref).astype(x.dtype), atol=1e-5)
    assert jnp.allclose(sin, jnp.sin(emb_ref).astype(x.dtype), atol=1e-5)

    print("KERNEL_OK")
</pallas_src>

<mosaic_0001>
module attributes {stable_mosaic.version = 11 : i64} {
  func.func @_rope_kernel_full(%arg0: i32, %arg1: i32, %arg2: memref<1x8x1xi32, #tpu.memory_space<vmem>>, %arg3: memref<1x32xf32, #tpu.memory_space<vmem>>, %arg4: memref<1x8x32xf32, #tpu.memory_space<vmem>>, %arg5: memref<1x8x32xf32, #tpu.memory_space<vmem>>) attributes {dimension_semantics = [#tpu.dimension_semantics<parallel>, #tpu.dimension_semantics<parallel>], iteration_bounds = array<i64: 2, 1>, scalar_prefetch = 0 : i64, scratch_operands = 0 : i64, tpu.core_type = #tpu.core_type<tc>, window_params = [{transform_indices = @transform_0, window_bounds = array<i64: 1, 8, 1>}, {pipeline_mode = #tpu.pipeline_mode<synchronous>, transform_indices = @transform_1, window_bounds = array<i64: 1, 32>}, {transform_indices = @transform_2, window_bounds = array<i64: 1, 8, 32>}, {transform_indices = @transform_3, window_bounds = array<i64: 1, 8, 32>}]} {
    %c0 = arith.constant 0 : index
    %c0_0 = arith.constant 0 : index
    %c0_1 = arith.constant 0 : index
    %0 = vector.load %arg2[%c0, %c0_0, %c0_1] : memref<1x8x1xi32, #tpu.memory_space<vmem>>, vector<1x8x1xi32>
    %1 = vector.shape_cast %0 : vector<1x8x1xi32> to vector<8x1xi32>
    %2 = arith.sitofp %1 : vector<8x1xi32> to vector<8x1xf32>
    %c0_2 = arith.constant 0 : index
    %c0_3 = arith.constant 0 : index
    %3 = vector.load %arg3[%c0_2, %c0_3] : memref<1x32xf32, #tpu.memory_space<vmem>>, vector<1x32xf32>
    %4 = vector.broadcast %2 : vector<8x1xf32> to vector<8x32xf32>
    %5 = vector.broadcast %3 : vector<1x32xf32> to vector<8x32xf32>
    %6 = arith.mulf %4, %5 : vector<8x32xf32>
    %7 = math.cos %6 : vector<8x32xf32>
    %c0_4 = arith.constant 0 : index
    %c0_5 = arith.constant 0 : index
    %c0_6 = arith.constant 0 : index
    %8 = vector.load %arg4[%c0_4, %c0_5, %c0_6] : memref<1x8x32xf32, #tpu.memory_space<vmem>>, vector<1x8x32xf32>
    %9 = vector.shape_cast %8 : vector<1x8x32xf32> to vector<8x32xf32>
    %10 = vector.shape_cast %7 : vector<8x32xf32> to vector<1x8x32xf32>
    tpu.vector_store %arg4[%c0_4, %c0_5, %c0_6], %10 {strides = array<i32>} : memref<1x8x32xf32, #tpu.memory_space<vmem>>, vector<1x8x32xf32>,
    %11 = math.sin %6 : vector<8x32xf32>
    %c0_7 = arith.constant 0 : index
    %c0_8 = arith.constant 0 : index
    %c0_9 = arith.constant 0 : index
    %12 = vector.load %arg5[%c0_7, %c0_8, %c0_9] : memref<1x8x32xf32, #tpu.memory_space<vmem>>, vector<1x8x32xf32>
    %13 = vector.shape_cast %12 : vector<1x8x32xf32> to vector<8x32xf32>
    %14 = vector.shape_cast %11 : vector<8x32xf32> to vector<1x8x32xf32>
    tpu.vector_store %arg5[%c0_7, %c0_8, %c0_9], %14 {strides = array<i32>} : memref<1x8x32xf32, #tpu.memory_space<vmem>>, vector<1x8x32xf32>,
    return
  }
  func.func @transform_0(%arg0: i32, %arg1: i32) -> (i32, i32, i32) {
    %c0_i32 = arith.constant 0 : i32
    %c0_i32_0 = arith.constant 0 : i32
    return %arg0, %arg1, %c0_i32 : i32, i32, i32
  }
  func.func @transform_1(%arg0: i32, %arg1: i32) -> (i32, i32) {
    %c0_i32 = arith.constant 0 : i32
    %c0_i32_0 = arith.constant 0 : i32
    %c0_i32_1 = arith.constant 0 : i32
    return %c0_i32, %c0_i32_0 : i32, i32
  }
  func.func @transform_2(%arg0: i32, %arg1: i32) -> (i32, i32, i32) {
    %c0_i32 = arith.constant 0 : i32
    %c0_i32_0 = arith.constant 0 : i32
    return %arg0, %arg1, %c0_i32 : i32, i32, i32
  }
  func.func @transform_3(%arg0: i32, %arg1: i32) -> (i32, i32, i32) {
    %c0_i32 = arith.constant 0 : i32
    %c0_i32_0 = arith.constant 0 : i32
    return %arg0, %arg1, %c0_i32 : i32, i32, i32
  }
}

</mosaic_0001>

<bundles_post_ra>
// kernel: tpu_custom_call.1
= control target key start
LH: loop header
LB: loop body
LE: loop exit
PB: predicated region body
PF: predicated region fallthrough
CT: control target
= control target key end

     0   :  { %9 = vsyncpa [#allocation3], 0  ;;  %s978_s0 = inlined_call_operand.vmem [shape: s32[2,8,1], index: 0, kind: input, shape index: {}]   ;;  %s979_s1 = inlined_call_operand.vmem [shape: f32[1,32], index: 1, kind: input, shape index: {}]   ;;  %s980_s2 = inlined_call_operand.hbm [shape: f32[2,8,32], index: 2, kind: output, shape index: {0}]   ;;  %s981_s3 = inlined_call_operand.hbm [shape: f32[2,8,32], index: 3, kind: output, shape index: {1}]  }
   0x1   :  { %11 = vsyncpa [#allocation3 + $0x1], 0 }
   0x2   :  { %12 = vsyncpa [#allocation5], 0 }
   0x3   :  { %14 = vsyncpa [#allocation5 + $0x1], 0  ;;  %s807_s12 = smov 0   ;;  %s809_s13 = smov 0  }
   0x4   :  { %s811_s14 = smov 0   ;;  %s813_s15 = smov 0  }
   0x5   :  { %s815_s16 = smov 0   ;;  %s817_s17 = smov 0  }
   0x6 LB: > { %s567_s18 = sadd.s32 4294967295, %s776_s17   ;;  %s568_s19 = sadd.s32 4294967294, %s776_s17   ;;  %s776_s17 = sphi %s817_s17, %s20_s17   ;;  %s772_s16 = sphi %s815_s16, %s988_s16   ;;  %s768_s15 = sphi %s813_s15, %s987_s15   ;;  %s764_s14 = sphi %s811_s14, %s986_s14   ;;  %s760_s13 = sphi %s809_s13, %s985_s13   ;;  %s756_s12 = sphi %s807_s12, %s984_s12  }
   0x7   : > { %s32_s20 = sadd.s32 1, %s772_s16  ;;  %s90_s21 = sadd.s32 1, %s764_s14 }
   0x8   : > { %p34_p0 = scmp.ge.s32.totalorder %s32_s20, 2  ;;  %p100_p1 = scmp.ne.s32.totalorder %s764_s14, %s760_s13 }
   0x9   : > { %p101_p2 = scmp.eq.s32.totalorder %s567_s18, 1  ;;  %p106_p3 = scmp.ne.s32.totalorder %s760_s13, %s756_s12 }
   0xa   : > { %s990_s20 = smov (%p34_p0, %s32_s20), 0  ;;  %p107_p5 = scmp.eq.s32.totalorder %s568_s19, 1 }
   0xb   : > { %p847_p4 = por %p101_p2, %p100_p1  ;;  %s85_s23 = ssub.s32 %s772_s16, %s990_s20 }
   0xc   : > { %p571_p6 = scmp.ge.s32.totalorder %s776_s17, 1  ;;  %p88_p7 = scmp.eq.s32.totalorder %s85_s23, 0 }
   0xd   : > { %p854_p8 = por %p107_p5, %p106_p3  ;;  %p166_p9 = scmp.lt.s32.totalorder %s776_s17, 3 }
   0xe   : > { %s860_s25 = scalar_select %p88_p7, %s764_s14, %s90_s21  }
   0xf   : > { %p167_p10 = pnand %p571_p6, %p166_p9 }
  0x10   : > { %p197_p11 = scmp.lt.s32.totalorder (!%p167_p10), %s768_s15, 1  ;;  %v778_v0 = vmov (!%p167_p10), 0   ;;  %v575_v3 = vld [vmem:[%s979_s1] ss:$0 sm:$0xff] (!%p167_p10)  ;;  %v779_v16 = vmov (!%p167_p10), 683565275  }
  0x11   : > { %170 = sbr.rel (%p167_p10) target bundleno = 277 (0x115), region = 28  ;;  %661 = vset.pattern.permute.xlu0 (!%p167_p10), %v778_v0  ;;  %v780_v18 = vmov (!%p167_p10), 2475754826   ;;  %v781_v21 = vmov (!%p167_p10), 2131351028   ;;  %s891_s6 = sand.u32 (!%p167_p10), 1, %s760_s13  }
  0x12   : > { %v782_v24 = vmov (!%p167_p10), 2102212464   ;;  %v783_v27 = vmov (!%p167_p10), 920167782   ;;  %v784_v30 = vmov (!%p167_p10), 1326507024  }
  0x13   : > { %s572_s7 = sshll.u32 (!%p167_p10), %s891_s6, 3  ;;  %s586_s8 = sshll.u32 (!%p167_p10), %s768_s15, 7  ;;  %vm322_vm10 = vcmask (!%p167_p10), 261120  }
  0x14   : > { %s189_s9 = scalar_lea.vmem (!%p167_p10), [#allocation2], %s572_s7  ;;  %s196_s11 = scalar_lea.vmem (!%p167_p10), [#allocation4], %s572_s7 }
  0x15   : > { %s449_s10 = sshll.u32 (!%p167_p10), %s189_s9, 4  ;;  %s463_s18 = sshll.u32 (!%p167_p10), %s196_s11, 4  ;;  %s901_s10 = int_to_ptr.vmem [resolvable:$true] %s449_s10  ;;  %s908_s18 = int_to_ptr.vmem [resolvable:$true] %s463_s18 }
  0x16   : > { %s898_s23 = scalar_lea.hbm (!%p167_p10), %s980_s2, %s586_s8  ;;  %s430_s28 = scalar_lea.sflag (!%p167_p10), [#allocation3], %s891_s6 }
  0x17   : > { %s666_s29 = scalar_lea.vmem (!%p167_p10), %s901_s10, 128 }
  0x18   : > { %s198_s26 = scalar_select %p197_p11, %s768_s15, 1 }
  0x19   : > { %p667_p12 = scmp.ne.s32.totalorder %s901_s10, %s666_s29 }
  0x1a   : > { %s574_s27 = sshll.u32 %s198_s26, 3 }
  0x1b   : > { %s203_s30 = scalar_lea.vmem %s978_s0, %s574_s27  ;;  %s906_s27 = scalar_lea.hbm %s981_s3, %s586_s8 }
  0x1c   : > { %v204_v1 = vld [vmem:[%s203_s30] sm:$0xff]  ;;  %p668_p13 = pnand %p667_p12, %p847_p4  ;;  %s785_s30 = smov [#allocation2]  }
  0x1d   : > { %v205_v2 = vcvt.s32.f32 %v204_v1  ;;  %s670_s4 = sshll.u32 %s785_s30, 4  ;;  %s671_s4 = int_to_ptr.vmem [resolvable:$false] %s670_s4 }
  0x1e   : > { %p669_p0 = pneg %p668_p13  ;;  %s672_s5 = scalar_lea.vmem %s671_s4, 256 }
  0x1f   : > { %209 = vperm.xlu0 %661, %v205_v2   ;;  %p673_p1 = scmp.lt.s32.totalorder %s901_s10, %s671_s4  ;;  %p674_p2 = scmp.lt.s32.totalorder %s672_s5, %s666_s29 }
  0x21   : > { %p675_p3 = por %p674_p2, %p673_p1 }
  0x23   : > { %p676_p5 = pnand %p675_p3, %p669_p0 }
  0x9e   : > { %v210_v4 = vpop.permute.xlu0 %209 }
  0x9f   : > { %v870_v5 = vmul.f32 %v575_v3, %v210_v4 }
  0xa1   : > { %v222_v6 = vand.u32 2139095040, %v870_v5  ;;  %v219_v10 = vand.u32 2147483647, %v870_v5  ;;  %vm221_vm7 = vcmp.lt.s32.totalorder %v870_v5, 0 }
  0xa3   : > { %v223_v7 = vshrl.u32 %v222_v6, 23  ;;  %v226_v13 = vand.u32 8388607, %v219_v10  ;;  %vm220_vm8 = vcmp.le.f32.partialorder %v219_v10, 0.7853982 }
  0xa5   : > { %v576_v8 = vadd.s32 4294967169, %v223_v7  ;;  %v227_v32 = vor.u32 8388608, %v226_v13 }
  0xa7   : > { %v229_v9 = vadd.s32 1, %v576_v8  ;;  %v267_v46 = vshll.u32 %v227_v32, 8 }
  0xa9   : > { %vm230_vm0 = vcmp.gt.s32.totalorder %v229_v9, 0 }
  0xaa   : > { %v231_v11 = vsel %vm230_vm0, %v229_v9, 0  ;;  %vm311_vm0 = vweird.f32 %v870_v5 }
  0xab   : > { %v233_v12 = vand.u32 31, %v231_v11  ;;  %v232_v15 = vshrl.u32 %v231_v11, 5 }
  0xad   : > { %v234_v14 = vsub.s32 32, %v233_v12  ;;  %v236_v17 = vshll.u32 %v779_v16, %v233_v12  ;;  %v239_v19 = vshll.u32 %v780_v18, %v233_v12  ;;  %v242_v23 = vshll.u32 %v781_v21, %v233_v12 }
  0xae   : > { %v245_v26 = vshll.u32 %v782_v24, %v233_v12  ;;  %v248_v29 = vshll.u32 %v783_v27, %v233_v12  ;;  %vm251_vm1 = vcmp.lt.s32.totalorder %v232_v15, 1  ;;  %vm254_vm2 = vcmp.lt.s32.totalorder %v232_v15, 4 }
  0xaf   : > { %v237_v20 = vshrl.u32 %v780_v18, %v234_v14  ;;  %v240_v22 = vshrl.u32 %v781_v21, %v234_v14  ;;  %v243_v25 = vshrl.u32 %v782_v24, %v234_v14  ;;  %v246_v28 = vshrl.u32 %v783_v27, %v234_v14 }
  0xb0   : > { %v249_v31 = vshrl.u32 %v784_v30, %v234_v14  ;;  %v235_v41 = vshrl.u32 %v779_v16, %v234_v14  ;;  %vm253_vm3 = vcmp.lt.s32.totalorder %v232_v15, 3  ;;  %vm252_vm4 = vcmp.lt.s32.totalorder %v232_v15, 2 }
  0xb1   : > { %v238_v33 = vor.u32 %v237_v20, %v236_v17  ;;  %v241_v34 = vor.u32 %v240_v22, %v239_v19  ;;  %v244_v35 = vor.u32 %v243_v25, %v242_v23  ;;  %v247_v36 = vor.u32 %v246_v28, %v245_v26 }
  0xb2   : > { %v250_v37 = vor.u32 %v249_v31, %v248_v29 }
  0xb3   : > { %v256_v38 = vsel %vm254_vm2, %v244_v35, 2102212464  ;;  %v259_v39 = vsel %vm251_vm1, %v238_v33, %v241_v34  ;;  %v263_v40 = vsel %vm251_vm1, %v241_v34, %v244_v35  ;;  %v260_v42 = vsel %vm254_vm2, %v247_v36, 920167782 }
  0xb4   : > { %v264_v43 = vsel %vm254_vm2, %v250_v37, 1326507024  ;;  %v261_v44 = vsel %vm253_vm3, %v244_v35, %v260_v42  ;;  %v255_v47 = vsel %vm251_vm1, %v235_v41, %v238_v33  ;;  %v257_v48 = vsel %vm253_vm3, %v241_v34, %v256_v38 }
  0xb5   : > { %v265_v45 = vsel %vm253_vm3, %v247_v36, %v264_v43  ;;  %v262_v49 = vsel %vm252_vm4, %v259_v39, %v261_v44  ;;  %v258_v55 = vsel %vm252_vm4, %v255_v47, %v257_v48 }
  0xb6   : > { %v266_v50 = vsel %vm252_vm4, %v263_v40, %v265_v45  ;;  %v879_v53 = vmul.u32.u64.low %v267_v46, %v262_v49  ;;  %v880_v54 = vmul.u32.u64.high %v267_v46, %v262_v49, %v879_v53  ;;  %v274_v57 = vmul.u32 %v267_v46, %v258_v55 }
  0xb7   : > { %v876_v51 = vmul.u32.u64.low %v267_v46, %v266_v50  ;;  %v877_v52 = vmul.u32.u64.high %v267_v46, %v266_v50, %v876_v51 }
  0xb8   : > { %v277_v56 = vadd.s32 1, %v880_v54 }
  0xb9   : > { %vm276_vm5 = vc.u32 %v877_v52, %v879_v53  ;;  %v275_v6 = vadd.s32 %v879_v53, %v877_v52 }
  0xba   : > { %v278_v58 = vsel %vm276_vm5, %v277_v56, %v880_v54 }
  0xbb   : > { %v279_v59 = vadd.s32 %v278_v58, %v274_v57 }
  0xbd   : > { %v280_v60 = vadd.s32 536870912, %v279_v59 }
  0xbf   : > { %v281_v61 = vshrl.u32 %v280_v60, 30 }
  0xc1   : > { %v282_v62 = vshll.u32 %v281_v61, 30  ;;  %v305_v19 = vsub.s32 4, %v281_v61 }
  0xc3   : > { %v283_v63 = vsub.s32 %v279_v59, %v282_v62  ;;  %v306_v22 = vsel %vm221_vm7, %v305_v19, %v281_v61 }
  0xc4   : > { %v308_v24 = vsel %vm220_vm8, 0, %v306_v22 }
  0xc5   : > { %v285_v0 = vsub.s32 0, %v283_v63  ;;  %v417_v25 = vadd.s32 3, %v308_v24  ;;  %v312_v26 = vand.u32 3, %v308_v24 }
  0xc7   : > { %v577_v1 = vmin.u32 %v285_v0, %v283_v63  ;;  %v418_v27 = vand.u32 3, %v417_v25  ;;  %vm317_vm9 = vcmp.eq.s32.totalorder %v312_v26, 2  ;;  %vm314_vm12 = vcmp.eq.s32.totalorder %v312_v26, 0 }
  0xc8   : > { %vm313_vm14 = vcmp.lt.s32.totalorder %v312_v26, 2 }
  0xc9   : > { %v287_v2 = vclz %v577_v1  ;;  %vm423_vm11 = vcmp.eq.s32.totalorder %v418_v27, 2  ;;  %vm420_vm13 = vcmp.eq.s32.totalorder %v418_v27, 0  ;;  %vm419_vm15 = vcmp.lt.s32.totalorder %v418_v27, 2 }
  0xcb   : > { %v578_v3 = vadd.s32 4294967294, %v287_v2 }
  0xcd   : > { %vm579_vm6 = vcmp.lt.s32.totalorder %v578_v3, 0 }
  0xce   : > { %v290_v4 = vsel %vm579_vm6, 0, %v578_v3 }
  0xcf   : > { %v291_v7 = vsub.s32 32, %v290_v4  ;;  %v295_v8 = vsub.s32 4294967266, %v290_v4  ;;  %v292_v9 = vshll.u32 %v283_v63, %v290_v4 }
  0xd1   : > { %v293_v11 = vshrl.u32 %v275_v6, %v291_v7  ;;  %v296_v12 = vadd.s32 127, %v295_v8 }
  0xd3   : > { %v294_v13 = vor.u32 %v293_v11, %v292_v9  ;;  %v297_v14 = vshll.u32 %v296_v12, 23 }
  0xd5   : > { %v298_v15 = vor.u32 4788187, %v297_v14  ;;  %v301_v17 = vcvt.s32.f32 %v294_v13 }
  0xd7   : > { %v299_v16 = vand.u32 2147483647, %v298_v15 }
  0xd9   : > { %v302_v18 = vmul.f32 %v301_v17, %v299_v16 }
  0xdb   : > { %v303_v20 = vxor.u32 2147483648, %v302_v18 }
  0xdd   : > { %v304_v21 = vsel %vm221_vm7, %v303_v20, %v302_v18 }
  0xde   : > { %v307_v23 = vsel %vm220_vm8, %v870_v5, %v304_v21 }
  0xdf   : > { %662 = vcosq.f32 %v307_v23 }
  0xe0   : > { %664 = vsinq.f32 %v307_v23 }
  0xe9   : > { %v663_v28 = vpop.eup %662 }
  0xea   : > { %v665_v29 = vpop.eup %664  ;;  %v318_v30 = vxor.u32 2147483648, %v663_v28 }
  0xeb   : > { %v315_v31 = vxor.u32 2147483648, %v665_v29 }
  0xec   : > { %v319_v10 = vsel %vm317_vm9, %v318_v30, %v665_v29  ;;  %v425_v32 = vsel %vm423_vm11, %v318_v30, %v665_v29 }
  0xed   : > { %v316_v33 = vsel %vm314_vm12, %v663_v28, %v315_v31  ;;  %v422_v34 = vsel %vm420_vm13, %v663_v28, %v315_v31 }
  0xee   : > { %v320_v35 = vsel %vm313_vm14, %v316_v33, %v319_v10  ;;  %v426_v36 = vsel %vm419_vm15, %v422_v34, %v425_v32 }
  0xef   : > { %v321_v37 = vsel %vm311_vm0, nan, %v320_v35  ;;  %v427_v38 = vsel %vm311_vm0, nan, %v426_v36 }
  0xf0   : > { %323 = vst.msk [vmem:[%s189_s9] sm:$0xff] %vm322_vm10, %v321_v37  ;;  %428 = vst.msk [vmem:[%s196_s11] sm:$0xff] %vm322_vm10, %v427_v38 }
  0xf1   : > { %679 = shalt.err (!%p676_p5)
}
  0xf2   : > { %s680_s7 = scalar_lea.hbm %s898_s23, 128  ;;  %s684_s11 = scalar_lea.hbm %s980_s2, 256 }
  0xf3   : > { %p681_p6 = scmp.ne.s32.totalorder %s898_s23, %s680_s7  ;;  %p685_p10 = scmp.lt.u32.totalorder %s898_s23, %s980_s2 }
  0xf4   : > { %p686_p11 = scmp.lt.u32.totalorder %s684_s11, %s680_s7  ;;  %p688_p13 = scmp.lt.u32.totalorder %s680_s7, %s898_s23 }
  0xf5   : > { %p682_p7 = pnand %p681_p6, %p847_p4 }
  0xf6   : > { %p687_p12 = por %p686_p11, %p685_p10 }
  0xf7   : > { %p683_p9 = pneg %p682_p7 }
  0xf8   : > { %p689_p0 = por %p688_p13, %p687_p12 }
  0xfa   : > { %p690_p1 = pnand %p689_p0, %p683_p9 }
  0xfc   : > { %693 = shalt.err (!%p690_p1)
}
  0xfd   : > { %594 = dma.vmem_to_hbm [thread:$0]  (%p847_p4), %s901_s10, 128, %s898_s23, %s430_s28  }
  0xfe   : > { %s435_s15 = scalar_lea.sflag [#allocation5], %s891_s6  ;;  %s694_s26 = scalar_lea.vmem %s908_s18, 128 }
  0xff   : > { %p695_p2 = scmp.ne.s32.totalorder %s908_s18, %s694_s26  ;;  %s786_s29 = smov [#allocation4]  }
 0x100   : > { %s698_s30 = sshll.u32 %s786_s29, 4  ;;  %s699_s30 = int_to_ptr.vmem [resolvable:$false] %s698_s30 }
 0x101   : > { %p696_p3 = pnand %p695_p2, %p847_p4  ;;  %s700_s4 = scalar_lea.vmem %s699_s30, 256 }
 0x102   : > { %p701_p6 = scmp.lt.s32.totalorder %s908_s18, %s699_s30  ;;  %p702_p7 = scmp.lt.s32.totalorder %s700_s4, %s694_s26 }
 0x103   : > { %p697_p5 = pneg %p696_p3 }
 0x104   : > { %p703_p9 = por %p702_p7, %p701_p6 }
 0x106   : > { %p704_p10 = pnand %p703_p9, %p697_p5 }
 0x108   : > { %707 = shalt.err (!%p704_p10)
}
 0x109   : > { %s708_s6 = scalar_lea.hbm %s906_s27, 128  ;;  %s712_s28 = scalar_lea.hbm %s981_s3, 256 }
 0x10a   : > { %p709_p11 = scmp.ne.s32.totalorder %s906_s27, %s708_s6  ;;  %p713_p0 = scmp.lt.u32.totalorder %s906_s27, %s981_s3 }
 0x10b   : > { %p714_p1 = scmp.lt.u32.totalorder %s712_s28, %s708_s6  ;;  %p716_p3 = scmp.lt.u32.totalorder %s708_s6, %s906_s27 }
 0x10c   : > { %p710_p12 = pnand %p709_p11, %p847_p4 }
 0x10d   : > { %p715_p2 = por %p714_p1, %p713_p0 }
 0x10e   : > { %p711_p13 = pneg %p710_p12 }
 0x10f   : > { %p717_p5 = por %p716_p3, %p715_p2 }
 0x111   : > { %p718_p6 = pnand %p717_p5, %p711_p13 }
 0x113   : > { %721 = shalt.err (!%p718_p6)
}
 0x114   : > { %595 = dma.vmem_to_hbm [thread:$0]  (%p847_p4), %s908_s18, 128, %s906_s27, %s435_s15  }
 0x115 PF: > { %p605_p7 = scmp.ge.s32.totalorder %s776_s17, 2  ;;  %s475_s8 = sand.u32 1, %s756_s12  }
 0x116   : > { %s476_s9 = scalar_lea.sflag [#allocation3], %s475_s8 }
 0x117   : > { %p599_p9 = pnand %p605_p7, %p854_p8 }
 0x119   : > { %747 = dma.done.wait (!%p599_p9), %s476_s9, 128  }
 0x11a   : > { %749 = vsyncadd (!%p599_p9), %s476_s9, 4294967168  ;;  %s485_s11 = scalar_lea.sflag [#allocation5], %s475_s8 }
 0x11b   : > { %751 = dma.done.wait (!%p599_p9), %s485_s11, 128  }
 0x11c   : > { %753 = vsyncadd (!%p599_p9), %s485_s11, 4294967168  ;;  %s20_s17 = sadd.s32 1, %s776_s17   ;;  %s984_s12 = smov %s760_s13 }
 0x11d   : > { %p17_p10 = scmp.ge.s32.totalorder %s20_s17, 4   ;;  %s985_s13 = smov %s764_s14 }
 0x11e   : > { %s986_s14 = smov %s860_s25  ;;  %s987_s15 = smov %s772_s16 }
 0x11f   : > { %s988_s16 = smov %s990_s20  ;;  %19 = sbr.rel (!%p17_p10) target bundleno = 6 (0x6), region = 80 }
 0x126   :  { %490 = vsyncpa [#allocation3], 1 }
 0x127   :  { %492 = vsyncpa [#allocation3 + $0x1], 1 }
 0x128   :  { %493 = vsyncpa [#allocation5], 1 }
 0x129   :  { %495 = vsyncpa [#allocation5 + $0x1], 1 }

</bundles_post_ra>
